<compile_context>
chip_gen: v6e
topology: v6e:2x2x1
jax: 0.10.0
libtpu: 0.0.40
codegen_flags: <defaults>
</compile_context>

<pallas_src>
import functools

import jax
import jax.numpy as jnp
from jax import lax
from jax.experimental import pallas as pl
from jax.experimental.pallas import tpu as pltpu

NEG_SLOPE = 0.1
BN_EPS = 1e-5
LANE = 128
MIB = 1 << 20


# --------------------------------------------------------------------------
# small helpers
# --------------------------------------------------------------------------
def _leaky(x):
    return jnp.where(x >= 0, x, NEG_SLOPE * x)


def _round_up(x, m):
    return (x + m - 1) // m * m


def _pad_rows(a, rows):
    return a if a.shape[0] == rows else jnp.pad(a, ((0, rows - a.shape[0]), (0, 0)))


def _pad_cols(a, cols):
    return a if a.shape[1] == cols else jnp.pad(a, ((0, 0), (0, cols - a.shape[1])))


def _pad_vec(v, n):
    v = v.astype(jnp.float32)
    return v if v.shape[0] == n else jnp.pad(v, (0, n - v.shape[0]))


def _maybe_lane_pad(k):
    """Pad a contraction/lane dim up to a multiple of 128 only when cheap.

    Lane-dense (unmasked) loads want a 128-multiple minor dim, but for tiny
    dims (e.g. 9*4=36 -> 128) the zero padding would dominate HBM traffic, so
    only pad when the blow-up is <= ~33%.  Unpadded dims remain legal because
    the block always spans the full array dim."""
    kp = _round_up(k, LANE)
    return kp if (kp - k) * 3 <= k else k


def _weight3x3(w_oihw, cp, kp):
    """OIHW (Cout,Cin,3,3) -> (Kp, Cp) bf16, rows tap-major (kh,kw,cin)."""
    cout, cin = w_oihw.shape[0], w_oihw.shape[1]
    w = jnp.transpose(w_oihw, (2, 3, 1, 0)).reshape(9 * cin, cout)
    return _pad_rows(_pad_cols(w, cp), kp).astype(jnp.bfloat16)


def _im2col(x_nhwc, stride, dilation):
    """3x3 im2col with padding=dilation.  Returns (N, Ho, Wo, 9*C), tap-major."""
    n, h, w, c = x_nhwc.shape
    pad = dilation
    ho = (h + 2 * pad - 2 * dilation - 1) // stride + 1
    wo = (w + 2 * pad - 2 * dilation - 1) // stride + 1
    xp = jnp.pad(x_nhwc, ((0, 0), (pad, pad), (pad, pad), (0, 0)))
    taps = []
    for kh in range(3):
        for kw in range(3):
            h0, w0 = kh * dilation, kw * dilation
            taps.append(lax.slice(
                xp,
                (0, h0, w0, 0),
                (n, h0 + (ho - 1) * stride + 1, w0 + (wo - 1) * stride + 1, c),
                (1, stride, stride, 1)))
    return jnp.concatenate(taps, axis=-1), ho, wo


def _plan(m, kp_max, cp, cinp, tm):
    """Pick the row tile and a VMEM limit sized to the real footprint.

    Bigger tiles amortize the ~0.35us/step grid overhead (63% -> ~85% of HBM
    roofline going 256 -> 512+ on v6e).  The budget targets ~44 MiB for the
    double-buffered working set so one tiling is safe on v5e/v6e/v7x, and the
    limit passed to Mosaic stays within [32, 56] MiB (>= every generation's
    scoped default, < v7x's 64 MiB physical)."""
    def footprint(t):
        per_tile = t * kp_max * 2 + t * cp * 2 + t * cp * 4 + t * cinp * 2
        resident = kp_max * cp * 2 + cinp * cp * 2 + 8 * cp * 4
        return 2 * (per_tile + resident)              # double-buffered pipeline
    tile = _round_up(min(tm, _round_up(m, 16)), 16)
    while tile > 32 and footprint(tile) > 44 * MIB:
        tile = _round_up(tile // 2, 16)
    mp = _round_up(m, tile)
    vmem = int(max(32 * MIB, min(footprint(tile) + 12 * MIB, 56 * MIB)))
    return tile, mp, vmem


# --------------------------------------------------------------------------
# Pass 1: tiled im2col matmul + per-tile BatchNorm partial statistics
# --------------------------------------------------------------------------
def _conv_stats_kernel(p_ref, w_ref, y_ref, s_ref, ss_ref):
    # One MXU GEMM per tile: (TM, Kp) x (Kp, Cp), bf16 in / f32 accumulate.
    acc = jnp.dot(p_ref[...], w_ref[...], preferred_element_type=jnp.float32)
    y_ref[...] = acc.astype(y_ref.dtype)
    # Per-tile BN partials as two direct stores (no concat/reshape copy).
    # Row-padded tiles are all-zero -> contribute nothing, which is exact
    # because the conv bias is folded away under training-mode BN.
    s_ref[...] = jnp.sum(acc, axis=0, keepdims=True)[None]
    ss_ref[...] = jnp.sum(acc * acc, axis=0, keepdims=True)[None]


def _conv_pass(patches, w2d, tile, vmem_limit):
    mp, kp = patches.shape
    cp = w2d.shape[1]
    ntiles = mp // tile
    cost = pl.CostEstimate(
        flops=int(2 * mp * kp * cp),
        transcendentals=0,
        bytes_accessed=int(mp * kp * 2 + kp * cp * 2 + mp * cp * 2
                           + 2 * ntiles * cp * 4))
    return pl.pallas_call(
        _conv_stats_kernel,
        grid=(ntiles,),
        in_specs=[
            pl.BlockSpec((tile, kp), lambda i: (i, 0)),
            # Grid-invariant weight slab stays VMEM-resident across the grid.
            pl.BlockSpec((kp, cp), lambda i: (0, 0)),
        ],
        out_specs=(
            pl.BlockSpec((tile, cp), lambda i: (i, 0)),
            pl.BlockSpec((1, 1, cp), lambda i: (i, 0, 0)),
            pl.BlockSpec((1, 1, cp), lambda i: (i, 0, 0)),
        ),
        out_shape=(
            jax.ShapeDtypeStruct((mp, cp), jnp.bfloat16),
            jax.ShapeDtypeStruct((ntiles, 1, cp), jnp.float32),
            jax.ShapeDtypeStruct((ntiles, 1, cp), jnp.float32),
        ),
        compiler_params=pltpu.CompilerParams(
            dimension_semantics=("parallel",),
            vmem_limit_bytes=vmem_limit),
        cost_estimate=cost,
    )(patches, w2d)


# --------------------------------------------------------------------------
# Pass 2: tiled BN affine (+ residual / fused 1x1 downsample) + LeakyReLU
# --------------------------------------------------------------------------
def _bn_act_kernel(y_ref, sc_ref, sh_ref, *rest, mode):
    out_ref = rest[-1]
    y = y_ref[...].astype(jnp.float32) * sc_ref[...] + sh_ref[...]
    if mode == "down":                          # fused 1x1-conv downsample + bias
        xs_ref, wd_ref, bd_ref = rest[0], rest[1], rest[2]
        y = y + jnp.dot(xs_ref[...], wd_ref[...],
                        preferred_element_type=jnp.float32) + bd_ref[...]
    elif mode == "add":                         # plain residual add
        y = y + rest[0][...].astype(jnp.float32)
    out_ref[...] = jnp.where(y >= 0, y, NEG_SLOPE * y).astype(out_ref.dtype)


def _bn_pass(y, s, ss, gamma_p, beta_p, m_true, tile, vmem_limit,
             mode="none", extra=(), out_dtype=jnp.bfloat16):
    mp, cp = y.shape
    ntiles = mp // tile

    # Finish the (tiny) global statistics reduction in plain JAX.
    tot = jnp.sum(s[:, 0, :], axis=0)
    tot2 = jnp.sum(ss[:, 0, :], axis=0)
    mean = tot / m_true
    # E[x^2]-mean^2 on f32 partials with a >=0 clamp.
    # TODO(synk): a shifted-moment / Welford formulation would be safer if the
    # conv outputs ever have means much larger than their spread.
    var = jnp.maximum(tot2 / m_true - mean * mean, 0.0)
    inv = lax.rsqrt(var + BN_EPS)
    sc = gamma_p * inv
    scale = sc.reshape(1, cp)
    shift = (beta_p - mean * sc).reshape(1, cp)

    in_specs = [
        pl.BlockSpec((tile, cp), lambda i: (i, 0)),
        pl.BlockSpec((1, cp), lambda i: (0, 0)),
        pl.BlockSpec((1, cp), lambda i: (0, 0)),
    ]
    args = [y, scale, shift]
    out_bytes = jnp.dtype(out_dtype).itemsize
    bytes_accessed = mp * cp * 2 + 2 * cp * 4 + mp * cp * out_bytes
    flops = 4 * mp * cp
    if mode == "down":
        xs, wd, bd = extra
        cinp = xs.shape[1]
        in_specs += [
            pl.BlockSpec((tile, cinp), lambda i: (i, 0)),
            pl.BlockSpec((cinp, cp), lambda i: (0, 0)),
            pl.BlockSpec((1, cp), lambda i: (0, 0)),
        ]
        args += [xs, wd, bd]
        bytes_accessed += mp * cinp * 2 + cinp * cp * 2 + cp * 4
        flops += 2 * mp * cinp * cp
    elif mode == "add":
        in_specs += [pl.BlockSpec((tile, cp), lambda i: (i, 0))]
        args += [extra[0]]
        bytes_accessed += mp * cp * 2

    return pl.pallas_call(
        functools.partial(_bn_act_kernel, mode=mode),
        grid=(ntiles,),
        in_specs=in_specs,
        out_specs=pl.BlockSpec((tile, cp), lambda i: (i, 0)),
        out_shape=jax.ShapeDtypeStruct((mp, cp), out_dtype),
        compiler_params=pltpu.CompilerParams(
            dimension_semantics=("parallel",),
            vmem_limit_bytes=vmem_limit),
        cost_estimate=pl.CostEstimate(flops=int(flops), transcendentals=0,
                                      bytes_accessed=int(bytes_accessed)),
    )(*args)


# --------------------------------------------------------------------------
# BasicBlock forward
# --------------------------------------------------------------------------
def basic_block_pallas(x_nchw, p, *, dilations=(1, 1, 1), down=True, tm=512):
    stride = 2 if down else 1
    n, cin, h, w = x_nchw.shape
    cout = p["w1"].shape[0]
    cp = _round_up(cout, LANE)                     # lane-dense channel padding

    k1, k23 = 9 * cin, 9 * cout
    kp1, kp23 = _maybe_lane_pad(k1), _maybe_lane_pad(k23)
    cinp = _maybe_lane_pad(cin) if down else cp    # lane-dense residual operand

    x = jnp.transpose(x_nchw, (0, 2, 3, 1)).astype(jnp.bfloat16)   # NHWC bf16

    # Layer 1 (stride, dilation[0]) sets the output resolution; layers 2/3 and
    # the residual all live at (Ho, Wo), so one M / tile / Mp works for all.
    pat1, ho, wo = _im2col(x, stride, dilations[0])
    m = n * ho * wo
    tile, mp, vmem = _plan(m, max(kp1, kp23), cp, cinp, tm)

    # ---- conv1 + bn1 + relu1 ----------------------------------------------
    y1, s1, ss1 = _conv_pass(
        _pad_rows(_pad_cols(pat1.reshape(m, k1), kp1), mp),
        _weight3x3(p["w1"], cp, kp1), tile, vmem)
    a1 = _bn_pass(y1, s1, ss1, _pad_vec(p["g1"], cp), _pad_vec(p["be1"], cp),
                  m, tile, vmem)
    a1 = a1[:m, :cout].reshape(n, ho, wo, cout)

    # ---- conv2 + bn2 + relu2 ----------------------------------------------
    pat2, _, _ = _im2col(a1, 1, dilations[1])
    y2, s2, ss2 = _conv_pass(
        _pad_rows(_pad_cols(pat2.reshape(m, k23), kp23), mp),
        _weight3x3(p["w2"], cp, kp23), tile, vmem)
    a2 = _bn_pass(y2, s2, ss2, _pad_vec(p["g2"], cp), _pad_vec(p["be2"], cp),
                  m, tile, vmem)
    a2 = a2[:m, :cout].reshape(n, ho, wo, cout)

    # ---- conv3 + bn3 + residual (+ fused 1x1 downsample) + relu3 ----------
    # Final kernel emits f32 directly (no separate XLA cast pass).
    pat3, _, _ = _im2col(a2, 1, dilations[2])
    y3, s3, ss3 = _conv_pass(
        _pad_rows(_pad_cols(pat3.reshape(m, k23), kp23), mp),
        _weight3x3(p["w3"], cp, kp23), tile, vmem)
    if down:
        xs = _pad_rows(_pad_cols(x[:, ::stride, ::stride, :].reshape(m, cin),
                                 cinp), mp)
        wd = _pad_rows(_pad_cols(jnp.transpose(p["wd"].reshape(cout, cin),
                                               (1, 0)), cp),
                       cinp).astype(jnp.bfloat16)
        bd = _pad_vec(p["bd"], cp).reshape(1, cp)
        out = _bn_pass(y3, s3, ss3, _pad_vec(p["g3"], cp), _pad_vec(p["be3"], cp),
                       m, tile, vmem, mode="down", extra=(xs, wd, bd),
                       out_dtype=jnp.float32)
    else:
        ident = _pad_rows(_pad_cols(x.reshape(m, cin), cp), mp)
        out = _bn_pass(y3, s3, ss3, _pad_vec(p["g3"], cp), _pad_vec(p["be3"], cp),
                       m, tile, vmem, mode="add", extra=(ident,),
                       out_dtype=jnp.float32)

    out = out[:m, :cout].reshape(n, ho, wo, cout)
    # TODO(synk): the NHWC->NCHW transpose remains a wrapper-side XLA op.
    return jnp.transpose(out, (0, 3, 1, 2))


# --------------------------------------------------------------------------
# Pure-JAX f32 reference (training-mode BN), for the self-check
# --------------------------------------------------------------------------
def _ref_basic_block(x, p, *, dilations=(1, 1, 1), down=True):
    def conv(x, w, b, stride, dilation, pad):
        y = lax.conv_general_dilated(
            x, w, window_strides=(stride, stride),
            padding=[(pad, pad), (pad, pad)],
            rhs_dilation=(dilation, dilation),
            dimension_numbers=("NCHW", "OIHW", "NCHW"),
            precision=lax.Precision.HIGHEST)
        return y + b.reshape(1, -1, 1, 1)

    def bn(x, g, be):
        m = jnp.mean(x, axis=(0, 2, 3), keepdims=True)
        v = jnp.mean((x - m) ** 2, axis=(0, 2, 3), keepdims=True)
        return g.reshape(1, -1, 1, 1) * (x - m) / jnp.sqrt(v + BN_EPS) \
            + be.reshape(1, -1, 1, 1)

    s = 2 if down else 1
    out = _leaky(bn(conv(x, p["w1"], p["b1"], s, dilations[0], dilations[0]),
                    p["g1"], p["be1"]))
    out = _leaky(bn(conv(out, p["w2"], p["b2"], 1, dilations[1], dilations[1]),
                    p["g2"], p["be2"]))
    out = bn(conv(out, p["w3"], p["b3"], 1, dilations[2], dilations[2]),
             p["g3"], p["be3"])
    identity = conv(x, p["wd"], p["bd"], s, 1, 0) if down else x
    return _leaky(out + identity)


# --------------------------------------------------------------------------
# self-test
# --------------------------------------------------------------------------
def _make_params(key, inplanes, planes, down):
    ks = jax.random.split(key, 14)

    def nrm(k, shape, scale=0.2):
        return scale * jax.random.normal(k, shape, jnp.float32)

    p = {
        "w1": nrm(ks[0], (planes, inplanes, 3, 3)), "b1": nrm(ks[1], (planes,)),
        "g1": 1.0 + nrm(ks[2], (planes,), 0.1), "be1": nrm(ks[3], (planes,), 0.1),
        "w2": nrm(ks[4], (planes, planes, 3, 3)), "b2": nrm(ks[5], (planes,)),
        "g2": 1.0 + nrm(ks[6], (planes,), 0.1), "be2": nrm(ks[7], (planes,), 0.1),
        "w3": nrm(ks[8], (planes, planes, 3, 3)), "b3": nrm(ks[9], (planes,)),
        "g3": 1.0 + nrm(ks[10], (planes,), 0.1), "be3": nrm(ks[11], (planes,), 0.1),
    }
    if down:
        p["wd"] = nrm(ks[12], (planes, inplanes, 1, 1))
        p["bd"] = nrm(ks[13], (planes,))
    return p


def _check(x, p, dilations, down):
    fwd = jax.jit(functools.partial(basic_block_pallas,
                                    dilations=dilations, down=down))
    out = jax.block_until_ready(fwd(x, p))
    ref = _ref_basic_block(x, p, dilations=dilations, down=down)
    err = jnp.abs(out.astype(jnp.float32) - ref)
    max_err = float(jnp.max(err))
    mean_err = float(jnp.mean(err))
    # bf16 matmuls + bf16 inter-layer activations vs the f32 HIGHEST-precision
    # reference => looser tolerance than a pure-f32 path.
    assert max_err < 8e-2, f"max abs err vs reference = {max_err}"
    assert mean_err < 1e-2, f"mean abs err vs reference = {mean_err}"
    return out


if __name__ == "__main__":
    key = jax.random.PRNGKey(0)
    k_p1, k_x1, k_p2, k_x2 = jax.random.split(key, 4)

    # down=True: inplanes=4 -> planes=8, stride 2, fused 1x1 downsample.
    inplanes, planes, n, hh, ww = 4, 8, 2, 16, 16
    p1 = _make_params(k_p1, inplanes, planes, down=True)
    x1 = jax.random.normal(k_x1, (n, inplanes, hh, ww), jnp.float32)
    out1 = _check(x1, p1, (1, 1, 1), True)
    assert out1.shape == (n, planes, hh // 2, ww // 2), out1.shape

    # down=False: identity residual path; exercises the larger-M grid (M=512).
    p2 = _make_params(k_p2, planes, planes, down=False)
    x2 = jax.random.normal(k_x2, (n, planes, hh, ww), jnp.float32)
    out2 = _check(x2, p2, (1, 1, 1), False)
    assert out2.shape == (n, planes, hh, ww), out2.shape

    print("KERNEL_OK")
</pallas_src>

<mosaic_0001>
module attributes {stable_mosaic.version = 11 : i64} {
  func.func @_conv_stats_kernel(%arg0: i32, %arg1: memref<128x36xbf16, #tpu.memory_space<vmem>>, %arg2: memref<36x128xbf16, #tpu.memory_space<vmem>>, %arg3: memref<128x128xbf16, #tpu.memory_space<vmem>>, %arg4: memref<1x1x128xf32, #tpu.memory_space<vmem>>, %arg5: memref<1x1x128xf32, #tpu.memory_space<vmem>>) attributes {dimension_semantics = [#tpu.dimension_semantics<parallel>], iteration_bounds = array<i64: 1>, scalar_prefetch = 0 : i64, scratch_operands = 0 : i64, tpu.core_type = #tpu.core_type<tc>, window_params = [{transform_indices = @transform_0, window_bounds = array<i64: 128, 36>}, {pipeline_mode = #tpu.pipeline_mode<synchronous>, transform_indices = @transform_1, window_bounds = array<i64: 36, 128>}, {transform_indices = @transform_2, window_bounds = array<i64: 128, 128>}, {transform_indices = @transform_3, window_bounds = array<i64: 1, 1, 128>}, {transform_indices = @transform_4, window_bounds = array<i64: 1, 1, 128>}]} {
    %c0 = arith.constant 0 : index
    %c0_0 = arith.constant 0 : index
    %0 = vector.load %arg1[%c0, %c0_0] : memref<128x36xbf16, #tpu.memory_space<vmem>>, vector<128x36xbf16>
    %c0_1 = arith.constant 0 : index
    %c0_2 = arith.constant 0 : index
    %1 = vector.load %arg2[%c0_1, %c0_2] : memref<36x128xbf16, #tpu.memory_space<vmem>>, vector<36x128xbf16>
    %cst = arith.constant dense<0.000000e+00> : vector<128x128xf32>
    %2 = tpu.matmul %0, %1, %cst {dimension_numbers = #tpu.dot_dimension_numbers<[1], [0], [0], [1], [0, 0, 1, 1], [], []>} : vector<128x36xbf16>, vector<36x128xbf16>, vector<128x128xf32> -> vector<128x128xf32>
    %3 = arith.truncf %2 : vector<128x128xf32> to vector<128x128xbf16>
    %c0_3 = arith.constant 0 : index
    %c0_4 = arith.constant 0 : index
    %4 = vector.load %arg3[%c0_3, %c0_4] : memref<128x128xbf16, #tpu.memory_space<vmem>>, vector<128x128xbf16>
    tpu.vector_store %arg3[%c0_3, %c0_4], %3 {strides = array<i32>} : memref<128x128xbf16, #tpu.memory_space<vmem>>, vector<128x128xbf16>,
    %cst_5 = arith.constant dense<0.000000e+00> : vector<128xf32>
    %5 = vector.multi_reduction <add>, %2, %cst_5 [0] : vector<128x128xf32> to vector<128xf32>
    %6 = vector.shape_cast %5 : vector<128xf32> to vector<1x128xf32>
    %7 = vector.shape_cast %6 : vector<1x128xf32> to vector<1x1x128xf32>
    %c0_6 = arith.constant 0 : index
    %c0_7 = arith.constant 0 : index
    %c0_8 = arith.constant 0 : index
    %8 = vector.load %arg4[%c0_6, %c0_7, %c0_8] : memref<1x1x128xf32, #tpu.memory_space<vmem>>, vector<1x1x128xf32>
    tpu.vector_store %arg4[%c0_6, %c0_7, %c0_8], %7 {strides = array<i32>} : memref<1x1x128xf32, #tpu.memory_space<vmem>>, vector<1x1x128xf32>,
    %9 = arith.mulf %2, %2 : vector<128x128xf32>
    %cst_9 = arith.constant dense<0.000000e+00> : vector<128xf32>
    %10 = vector.multi_reduction <add>, %9, %cst_9 [0] : vector<128x128xf32> to vector<128xf32>
    %11 = vector.shape_cast %10 : vector<128xf32> to vector<1x128xf32>
    %12 = vector.shape_cast %11 : vector<1x128xf32> to vector<1x1x128xf32>
    %c0_10 = arith.constant 0 : index
    %c0_11 = arith.constant 0 : index
    %c0_12 = arith.constant 0 : index
    %13 = vector.load %arg5[%c0_10, %c0_11, %c0_12] : memref<1x1x128xf32, #tpu.memory_space<vmem>>, vector<1x1x128xf32>
    tpu.vector_store %arg5[%c0_10, %c0_11, %c0_12], %12 {strides = array<i32>} : memref<1x1x128xf32, #tpu.memory_space<vmem>>, vector<1x1x128xf32>,
    return
  }
  func.func @transform_0(%arg0: i32) -> (i32, i32) {
    %c0_i32 = arith.constant 0 : i32
    %c0_i32_0 = arith.constant 0 : i32
    return %arg0, %c0_i32 : i32, i32
  }
  func.func @transform_1(%arg0: i32) -> (i32, i32) {
    %c0_i32 = arith.constant 0 : i32
    %c0_i32_0 = arith.constant 0 : i32
    %c0_i32_1 = arith.constant 0 : i32
    return %c0_i32, %c0_i32_0 : i32, i32
  }
  func.func @transform_2(%arg0: i32) -> (i32, i32) {
    %c0_i32 = arith.constant 0 : i32
    %c0_i32_0 = arith.constant 0 : i32
    return %arg0, %c0_i32 : i32, i32
  }
  func.func @transform_3(%arg0: i32) -> (i32, i32, i32) {
    %c0_i32 = arith.constant 0 : i32
    %c0_i32_0 = arith.constant 0 : i32
    %c0_i32_1 = arith.constant 0 : i32
    return %arg0, %c0_i32, %c0_i32_0 : i32, i32, i32
  }
  func.func @transform_4(%arg0: i32) -> (i32, i32, i32) {
    %c0_i32 = arith.constant 0 : i32
    %c0_i32_0 = arith.constant 0 : i32
    %c0_i32_1 = arith.constant 0 : i32
    return %arg0, %c0_i32, %c0_i32_0 : i32, i32, i32
  }
}

module attributes {stable_mosaic.version = 11 : i64} {
  func.func @_bn_act_kernel(%arg0: i32, %arg1: memref<128x128xbf16, #tpu.memory_space<vmem>>, %arg2: memref<1x128xf32, #tpu.memory_space<vmem>>, %arg3: memref<1x128xf32, #tpu.memory_space<vmem>>, %arg4: memref<128x128xbf16, #tpu.memory_space<vmem>>) attributes {dimension_semantics = [#tpu.dimension_semantics<parallel>], iteration_bounds = array<i64: 1>, scalar_prefetch = 0 : i64, scratch_operands = 0 : i64, tpu.core_type = #tpu.core_type<tc>, window_params = [{transform_indices = @transform_0, window_bounds = array<i64: 128, 128>}, {pipeline_mode = #tpu.pipeline_mode<synchronous>, transform_indices = @transform_1, window_bounds = array<i64: 1, 128>}, {pipeline_mode = #tpu.pipeline_mode<synchronous>, transform_indices = @transform_2, window_bounds = array<i64: 1, 128>}, {transform_indices = @transform_3, window_bounds = array<i64: 128, 128>}]} {
    %c0 = arith.constant 0 : index
    %c0_0 = arith.constant 0 : index
    %0 = vector.load %arg1[%c0, %c0_0] : memref<128x128xbf16, #tpu.memory_space<vmem>>, vector<128x128xbf16>
    %1 = arith.extf %0 : vector<128x128xbf16> to vector<128x128xf32>
    %c0_1 = arith.constant 0 : index
    %c0_2 = arith.constant 0 : index
    %2 = vector.load %arg2[%c0_1, %c0_2] : memref<1x128xf32, #tpu.memory_space<vmem>>, vector<1x128xf32>
    %3 = vector.broadcast %2 : vector<1x128xf32> to vector<128x128xf32>
    %4 = arith.mulf %1, %3 : vector<128x128xf32>
    %c0_3 = arith.constant 0 : index
    %c0_4 = arith.constant 0 : index
    %5 = vector.load %arg3[%c0_3, %c0_4] : memref<1x128xf32, #tpu.memory_space<vmem>>, vector<1x128xf32>
    %6 = vector.broadcast %5 : vector<1x128xf32> to vector<128x128xf32>
    %7 = arith.addf %4, %6 : vector<128x128xf32>
    %cst = arith.constant 0.000000e+00 : f32
    %8 = vector.broadcast %cst : f32 to vector<128x128xf32>
    %9 = arith.cmpf oge, %7, %8 : vector<128x128xf32>
    %cst_5 = arith.constant 1.000000e-01 : f32
    %10 = vector.broadcast %cst_5 : f32 to vector<128x128xf32>
    %11 = arith.mulf %10, %7 : vector<128x128xf32>
    %12 = arith.select %9, %7, %11 : vector<128x128xi1>, vector<128x128xf32>
    %13 = arith.truncf %12 : vector<128x128xf32> to vector<128x128xbf16>
    %c0_6 = arith.constant 0 : index
    %c0_7 = arith.constant 0 : index
    %14 = vector.load %arg4[%c0_6, %c0_7] : memref<128x128xbf16, #tpu.memory_space<vmem>>, vector<128x128xbf16>
    tpu.vector_store %arg4[%c0_6, %c0_7], %13 {strides = array<i32>} : memref<128x128xbf16, #tpu.memory_space<vmem>>, vector<128x128xbf16>,
    return
  }
  func.func @transform_0(%arg0: i32) -> (i32, i32) {
    %c0_i32 = arith.constant 0 : i32
    %c0_i32_0 = arith.constant 0 : i32
    return %arg0, %c0_i32 : i32, i32
  }
  func.func @transform_1(%arg0: i32) -> (i32, i32) {
    %c0_i32 = arith.constant 0 : i32
    %c0_i32_0 = arith.constant 0 : i32
    %c0_i32_1 = arith.constant 0 : i32
    return %c0_i32, %c0_i32_0 : i32, i32
  }
  func.func @transform_2(%arg0: i32) -> (i32, i32) {
    %c0_i32 = arith.constant 0 : i32
    %c0_i32_0 = arith.constant 0 : i32
    %c0_i32_1 = arith.constant 0 : i32
    return %c0_i32, %c0_i32_0 : i32, i32
  }
  func.func @transform_3(%arg0: i32) -> (i32, i32) {
    %c0_i32 = arith.constant 0 : i32
    %c0_i32_0 = arith.constant 0 : i32
    return %arg0, %c0_i32 : i32, i32
  }
}

module attributes {stable_mosaic.version = 11 : i64} {
  func.func @_conv_stats_kernel(%arg0: i32, %arg1: memref<128x72xbf16, #tpu.memory_space<vmem>>, %arg2: memref<72x128xbf16, #tpu.memory_space<vmem>>, %arg3: memref<128x128xbf16, #tpu.memory_space<vmem>>, %arg4: memref<1x1x128xf32, #tpu.memory_space<vmem>>, %arg5: memref<1x1x128xf32, #tpu.memory_space<vmem>>) attributes {dimension_semantics = [#tpu.dimension_semantics<parallel>], iteration_bounds = array<i64: 1>, scalar_prefetch = 0 : i64, scratch_operands = 0 : i64, tpu.core_type = #tpu.core_type<tc>, window_params = [{transform_indices = @transform_0, window_bounds = array<i64: 128, 72>}, {pipeline_mode = #tpu.pipeline_mode<synchronous>, transform_indices = @transform_1, window_bounds = array<i64: 72, 128>}, {transform_indices = @transform_2, window_bounds = array<i64: 128, 128>}, {transform_indices = @transform_3, window_bounds = array<i64: 1, 1, 128>}, {transform_indices = @transform_4, window_bounds = array<i64: 1, 1, 128>}]} {
    %c0 = arith.constant 0 : index
    %c0_0 = arith.constant 0 : index
    %0 = vector.load %arg1[%c0, %c0_0] : memref<128x72xbf16, #tpu.memory_space<vmem>>, vector<128x72xbf16>
    %c0_1 = arith.constant 0 : index
    %c0_2 = arith.constant 0 : index
    %1 = vector.load %arg2[%c0_1, %c0_2] : memref<72x128xbf16, #tpu.memory_space<vmem>>, vector<72x128xbf16>
    %cst = arith.constant dense<0.000000e+00> : vector<128x128xf32>
    %2 = tpu.matmul %0, %1, %cst {dimension_numbers = #tpu.dot_dimension_numbers<[1], [0], [0], [1], [0, 0, 1, 1], [], []>} : vector<128x72xbf16>, vector<72x128xbf16>, vector<128x128xf32> -> vector<128x128xf32>
    %3 = arith.truncf %2 : vector<128x128xf32> to vector<128x128xbf16>
    %c0_3 = arith.constant 0 : index
    %c0_4 = arith.constant 0 : index
    %4 = vector.load %arg3[%c0_3, %c0_4] : memref<128x128xbf16, #tpu.memory_space<vmem>>, vector<128x128xbf16>
    tpu.vector_store %arg3[%c0_3, %c0_4], %3 {strides = array<i32>} : memref<128x128xbf16, #tpu.memory_space<vmem>>, vector<128x128xbf16>,
    %cst_5 = arith.constant dense<0.000000e+00> : vector<128xf32>
    %5 = vector.multi_reduction <add>, %2, %cst_5 [0] : vector<128x128xf32> to vector<128xf32>
    %6 = vector.shape_cast %5 : vector<128xf32> to vector<1x128xf32>
    %7 = vector.shape_cast %6 : vector<1x128xf32> to vector<1x1x128xf32>
    %c0_6 = arith.constant 0 : index
    %c0_7 = arith.constant 0 : index
    %c0_8 = arith.constant 0 : index
    %8 = vector.load %arg4[%c0_6, %c0_7, %c0_8] : memref<1x1x128xf32, #tpu.memory_space<vmem>>, vector<1x1x128xf32>
    tpu.vector_store %arg4[%c0_6, %c0_7, %c0_8], %7 {strides = array<i32>} : memref<1x1x128xf32, #tpu.memory_space<vmem>>, vector<1x1x128xf32>,
    %9 = arith.mulf %2, %2 : vector<128x128xf32>
    %cst_9 = arith.constant dense<0.000000e+00> : vector<128xf32>
    %10 = vector.multi_reduction <add>, %9, %cst_9 [0] : vector<128x128xf32> to vector<128xf32>
    %11 = vector.shape_cast %10 : vector<128xf32> to vector<1x128xf32>
    %12 = vector.shape_cast %11 : vector<1x128xf32> to vector<1x1x128xf32>
    %c0_10 = arith.constant 0 : index
    %c0_11 = arith.constant 0 : index
    %c0_12 = arith.constant 0 : index
    %13 = vector.load %arg5[%c0_10, %c0_11, %c0_12] : memref<1x1x128xf32, #tpu.memory_space<vmem>>, vector<1x1x128xf32>
    tpu.vector_store %arg5[%c0_10, %c0_11, %c0_12], %12 {strides = array<i32>} : memref<1x1x128xf32, #tpu.memory_space<vmem>>, vector<1x1x128xf32>,
    return
  }
  func.func @transform_0(%arg0: i32) -> (i32, i32) {
    %c0_i32 = arith.constant 0 : i32
    %c0_i32_0 = arith.constant 0 : i32
    return %arg0, %c0_i32 : i32, i32
  }
  func.func @transform_1(%arg0: i32) -> (i32, i32) {
    %c0_i32 = arith.constant 0 : i32
    %c0_i32_0 = arith.constant 0 : i32
    %c0_i32_1 = arith.constant 0 : i32
    return %c0_i32, %c0_i32_0 : i32, i32
  }
  func.func @transform_2(%arg0: i32) -> (i32, i32) {
    %c0_i32 = arith.constant 0 : i32
    %c0_i32_0 = arith.constant 0 : i32
    return %arg0, %c0_i32 : i32, i32
  }
  func.func @transform_3(%arg0: i32) -> (i32, i32, i32) {
    %c0_i32 = arith.constant 0 : i32
    %c0_i32_0 = arith.constant 0 : i32
    %c0_i32_1 = arith.constant 0 : i32
    return %arg0, %c0_i32, %c0_i32_0 : i32, i32, i32
  }
  func.func @transform_4(%arg0: i32) -> (i32, i32, i32) {
    %c0_i32 = arith.constant 0 : i32
    %c0_i32_0 = arith.constant 0 : i32
    %c0_i32_1 = arith.constant 0 : i32
    return %arg0, %c0_i32, %c0_i32_0 : i32, i32, i32
  }
}

module attributes {stable_mosaic.version = 11 : i64} {
  func.func @_bn_act_kernel(%arg0: i32, %arg1: memref<128x128xbf16, #tpu.memory_space<vmem>>, %arg2: memref<1x128xf32, #tpu.memory_space<vmem>>, %arg3: memref<1x128xf32, #tpu.memory_space<vmem>>, %arg4: memref<128x4xbf16, #tpu.memory_space<vmem>>, %arg5: memref<4x128xbf16, #tpu.memory_space<vmem>>, %arg6: memref<1x128xf32, #tpu.memory_space<vmem>>, %arg7: memref<128x128xf32, #tpu.memory_space<vmem>>) attributes {dimension_semantics = [#tpu.dimension_semantics<parallel>], iteration_bounds = array<i64: 1>, scalar_prefetch = 0 : i64, scratch_operands = 0 : i64, tpu.core_type = #tpu.core_type<tc>, window_params = [{transform_indices = @transform_0, window_bounds = array<i64: 128, 128>}, {pipeline_mode = #tpu.pipeline_mode<synchronous>, transform_indices = @transform_1, window_bounds = array<i64: 1, 128>}, {pipeline_mode = #tpu.pipeline_mode<synchronous>, transform_indices = @transform_2, window_bounds = array<i64: 1, 128>}, {transform_indices = @transform_3, window_bounds = array<i64: 128, 4>}, {pipeline_mode = #tpu.pipeline_mode<synchronous>, transform_indices = @transform_4, window_bounds = array<i64: 4, 128>}, {pipeline_mode = #tpu.pipeline_mode<synchronous>, transform_indices = @transform_5, window_bounds = array<i64: 1, 128>}, {transform_indices = @transform_6, window_bounds = array<i64: 128, 128>}]} {
    %c0 = arith.constant 0 : index
    %c0_0 = arith.constant 0 : index
    %0 = vector.load %arg1[%c0, %c0_0] : memref<128x128xbf16, #tpu.memory_space<vmem>>, vector<128x128xbf16>
    %1 = arith.extf %0 : vector<128x128xbf16> to vector<128x128xf32>
    %c0_1 = arith.constant 0 : index
    %c0_2 = arith.constant 0 : index
    %2 = vector.load %arg2[%c0_1, %c0_2] : memref<1x128xf32, #tpu.memory_space<vmem>>, vector<1x128xf32>
    %3 = vector.broadcast %2 : vector<1x128xf32> to vector<128x128xf32>
    %4 = arith.mulf %1, %3 : vector<128x128xf32>
    %c0_3 = arith.constant 0 : index
    %c0_4 = arith.constant 0 : index
    %5 = vector.load %arg3[%c0_3, %c0_4] : memref<1x128xf32, #tpu.memory_space<vmem>>, vector<1x128xf32>
    %6 = vector.broadcast %5 : vector<1x128xf32> to vector<128x128xf32>
    %7 = arith.addf %4, %6 : vector<128x128xf32>
    %c0_5 = arith.constant 0 : index
    %c0_6 = arith.constant 0 : index
    %8 = vector.load %arg4[%c0_5, %c0_6] : memref<128x4xbf16, #tpu.memory_space<vmem>>, vector<128x4xbf16>
    %c0_7 = arith.constant 0 : index
    %c0_8 = arith.constant 0 : index
    %9 = vector.load %arg5[%c0_7, %c0_8] : memref<4x128xbf16, #tpu.memory_space<vmem>>, vector<4x128xbf16>
    %cst = arith.constant dense<0.000000e+00> : vector<128x128xf32>
    %10 = tpu.matmul %8, %9, %cst {dimension_numbers = #tpu.dot_dimension_numbers<[1], [0], [0], [1], [0, 0, 1, 1], [], []>} : vector<128x4xbf16>, vector<4x128xbf16>, vector<128x128xf32> -> vector<128x128xf32>
    %11 = arith.addf %7, %10 : vector<128x128xf32>
    %c0_9 = arith.constant 0 : index
    %c0_10 = arith.constant 0 : index
    %12 = vector.load %arg6[%c0_9, %c0_10] : memref<1x128xf32, #tpu.memory_space<vmem>>, vector<1x128xf32>
    %13 = vector.broadcast %12 : vector<1x128xf32> to vector<128x128xf32>
    %14 = arith.addf %11, %13 : vector<128x128xf32>
    %cst_11 = arith.constant 0.000000e+00 : f32
    %15 = vector.broadcast %cst_11 : f32 to vector<128x128xf32>
    %16 = arith.cmpf oge, %14, %15 : vector<128x128xf32>
    %cst_12 = arith.constant 1.000000e-01 : f32
    %17 = vector.broadcast %cst_12 : f32 to vector<128x128xf32>
    %18 = arith.mulf %17, %14 : vector<128x128xf32>
    %19 = arith.select %16, %14, %18 : vector<128x128xi1>, vector<128x128xf32>
    %c0_13 = arith.constant 0 : index
    %c0_14 = arith.constant 0 : index
    %20 = vector.load %arg7[%c0_13, %c0_14] : memref<128x128xf32, #tpu.memory_space<vmem>>, vector<128x128xf32>
    tpu.vector_store %arg7[%c0_13, %c0_14], %19 {strides = array<i32>} : memref<128x128xf32, #tpu.memory_space<vmem>>, vector<128x128xf32>,
    return
  }
  func.func @transform_0(%arg0: i32) -> (i32, i32) {
    %c0_i32 = arith.constant 0 : i32
    %c0_i32_0 = arith.constant 0 : i32
    return %arg0, %c0_i32 : i32, i32
  }
  func.func @transform_1(%arg0: i32) -> (i32, i32) {
    %c0_i32 = arith.constant 0 : i32
    %c0_i32_0 = arith.constant 0 : i32
    %c0_i32_1 = arith.constant 0 : i32
    return %c0_i32, %c0_i32_0 : i32, i32
  }
  func.func @transform_2(%arg0: i32) -> (i32, i32) {
    %c0_i32 = arith.constant 0 : i32
    %c0_i32_0 = arith.constant 0 : i32
    %c0_i32_1 = arith.constant 0 : i32
    return %c0_i32, %c0_i32_0 : i32, i32
  }
  func.func @transform_3(%arg0: i32) -> (i32, i32) {
    %c0_i32 = arith.constant 0 : i32
    %c0_i32_0 = arith.constant 0 : i32
    return %arg0, %c0_i32 : i32, i32
  }
  func.func @transform_4(%arg0: i32) -> (i32, i32) {
    %c0_i32 = arith.constant 0 : i32
    %c0_i32_0 = arith.constant 0 : i32
    %c0_i32_1 = arith.constant 0 : i32
    return %c0_i32, %c0_i32_0 : i32, i32
  }
  func.func @transform_5(%arg0: i32) -> (i32, i32) {
    %c0_i32 = arith.constant 0 : i32
    %c0_i32_0 = arith.constant 0 : i32
    %c0_i32_1 = arith.constant 0 : i32
    return %c0_i32, %c0_i32_0 : i32, i32
  }
  func.func @transform_6(%arg0: i32) -> (i32, i32) {
    %c0_i32 = arith.constant 0 : i32
    %c0_i32_0 = arith.constant 0 : i32
    return %arg0, %c0_i32 : i32, i32
  }
}

</mosaic_0001>

<bundles_post_ra>
// kernel: basic_block_pallas.7
= control target key start
LH: loop header
LB: loop body
LE: loop exit
PB: predicated region body
PF: predicated region fallthrough
CT: control target
= control target key end

     0   :  { %s455_s0 = inlined_call_operand.vmem [shape: bf16[128,128], index: 0, kind: input, shape index: {}]   ;;  %s456_s1 = inlined_call_operand.vmem [shape: f32[1,128], index: 1, kind: input, shape index: {}]   ;;  %s457_s2 = inlined_call_operand.vmem [shape: f32[1,128], index: 2, kind: input, shape index: {}]   ;;  %s458_s3 = inlined_call_operand.vmem [shape: bf16[128,128], index: 3, kind: output, shape index: {}]  }
   0x1   :  { %v259_v0 = vld [vmem:[%s455_s0] sm:$0xff]   ;;  %v330_v4 = vld [vmem:[%s455_s0 + $0x8] sm:$0xff]   ;;  %v331_v5 = vld [vmem:[%s455_s0 + $0x10] sm:$0xff]  }
   0x2   :  { %v370_v1 = vld [vmem:[%s456_s1] ss:$0 sm:$0xff]  ;;  %v260_v2 = vunpack.c.l.bf16 %v259_v0  ;;  %v261_v3 = vunpack.c.h.bf16 %v259_v0  ;;  %v332_v6 = vld [vmem:[%s455_s0 + $0x18] sm:$0xff]   ;;  %v264_v8 = vunpack.c.l.bf16 %v330_v4  ;;  %v265_v9 = vunpack.c.h.bf16 %v330_v4  ;;  %v334_v35 = vld [vmem:[%s455_s0 + $0x28] sm:$0xff]  }
   0x3   :  { %v384_v7 = vld [vmem:[%s457_s2] ss:$0 sm:$0xff]  ;;  %v268_v10 = vunpack.c.l.bf16 %v331_v5  ;;  %v269_v11 = vunpack.c.h.bf16 %v331_v5  ;;  %v272_v14 = vunpack.c.l.bf16 %v332_v6  ;;  %v273_v15 = vunpack.c.h.bf16 %v332_v6  ;;  %v335_v48 = vld [vmem:[%s455_s0 + $0x30] sm:$0xff]   ;;  %v336_v4 = vld [vmem:[%s455_s0 + $0x38] sm:$0xff]  }
   0x4   :  { %v53_v12 = vmul.f32 %v260_v2, %v370_v1  ;;  %v54_v13 = vmul.f32 %v261_v3, %v370_v1  ;;  %v55_v16 = vmul.f32 %v264_v8, %v370_v1  ;;  %v56_v17 = vmul.f32 %v265_v9, %v370_v1  ;;  %v333_v34 = vld [vmem:[%s455_s0 + $0x20] sm:$0xff]  }
   0x5   :  { %v57_v18 = vmul.f32 %v268_v10, %v370_v1  ;;  %v58_v19 = vmul.f32 %v269_v11, %v370_v1  ;;  %v59_v22 = vmul.f32 %v272_v14, %v370_v1  ;;  %v60_v23 = vmul.f32 %v273_v15, %v370_v1 }
   0x6   :  { %v76_v20 = vadd.f32 %v384_v7, %v53_v12  ;;  %v77_v21 = vadd.f32 %v384_v7, %v54_v13  ;;  %v78_v24 = vadd.f32 %v384_v7, %v55_v16  ;;  %v79_v25 = vadd.f32 %v384_v7, %v56_v17 }
   0x7   :  { %v80_v26 = vadd.f32 %v384_v7, %v57_v18  ;;  %v81_v27 = vadd.f32 %v384_v7, %v58_v19  ;;  %v82_v42 = vadd.f32 %v384_v7, %v59_v22  ;;  %v83_v43 = vadd.f32 %v384_v7, %v60_v23 }
   0x8   :  { %vm92_vm0 = vcmp.ge.f32.partialorder %v76_v20, 0.0  ;;  %vm93_vm1 = vcmp.ge.f32.partialorder %v77_v21, 0.0  ;;  %v108_v28 = vmul.f32 0.1, %v76_v20  ;;  %v109_v29 = vmul.f32 0.1, %v77_v21 }
   0x9   :  { %vm94_vm2 = vcmp.ge.f32.partialorder %v78_v24, 0.0  ;;  %vm95_vm3 = vcmp.ge.f32.partialorder %v79_v25, 0.0  ;;  %v110_v30 = vmul.f32 0.1, %v78_v24  ;;  %v111_v31 = vmul.f32 0.1, %v79_v25 }
   0xa   :  { %v124_v32 = vsel %vm92_vm0, %v76_v20, %v108_v28  ;;  %v125_v33 = vsel %vm93_vm1, %v77_v21, %v109_v29  ;;  %vm96_vm4 = vcmp.ge.f32.partialorder %v80_v26, 0.0  ;;  %vm97_vm5 = vcmp.ge.f32.partialorder %v81_v27, 0.0 }
   0xb   :  { %v293_v36 = vpack.c.bf16 %v125_v33, %v124_v32  ;;  %v126_v37 = vsel %vm94_vm2, %v78_v24, %v110_v30  ;;  %v127_v38 = vsel %vm95_vm3, %v79_v25, %v111_v31  ;;  %v112_v39 = vmul.f32 0.1, %v80_v26 }
   0xc   :  { %v298_v40 = vpack.c.bf16 %v127_v38, %v126_v37  ;;  %v113_v41 = vmul.f32 0.1, %v81_v27  ;;  %v276_v45 = vunpack.c.l.bf16 %v333_v34  ;;  %v277_v46 = vunpack.c.h.bf16 %v333_v34 }
   0xd   :  { %294 = vst [vmem:[%s458_s3] sm:$0xff] %v293_v36   ;;  %v128_v44 = vsel %vm96_vm4, %v80_v26, %v112_v39  ;;  %v280_v47 = vunpack.c.l.bf16 %v334_v35  ;;  %vm98_vm6 = vcmp.ge.f32.partialorder %v82_v42, 0.0  ;;  %vm99_vm7 = vcmp.ge.f32.partialorder %v83_v43, 0.0 }
   0xe   :  { %337 = vst [vmem:[%s458_s3 + $0x8] sm:$0xff] %v298_v40   ;;  %v129_v49 = vsel %vm97_vm5, %v81_v27, %v113_v41  ;;  %v114_v50 = vmul.f32 0.1, %v82_v42  ;;  %v115_v52 = vmul.f32 0.1, %v83_v43  ;;  %v61_v53 = vmul.f32 %v276_v45, %v370_v1 }
   0xf   :  { %v303_v51 = vpack.c.bf16 %v129_v49, %v128_v44  ;;  %v62_v54 = vmul.f32 %v277_v46, %v370_v1  ;;  %v281_v56 = vunpack.c.h.bf16 %v334_v35  ;;  %v63_v57 = vmul.f32 %v280_v47, %v370_v1 }
  0x10   :  { %v130_v55 = vsel %vm98_vm6, %v82_v42, %v114_v50  ;;  %v284_v58 = vunpack.c.l.bf16 %v335_v48  ;;  %v131_v59 = vsel %vm99_vm7, %v83_v43, %v115_v52  ;;  %v84_v60 = vadd.f32 %v384_v7, %v61_v53 }
  0x11   :  { %338 = vst [vmem:[%s458_s3 + $0x10] sm:$0xff] %v303_v51   ;;  %v85_v61 = vadd.f32 %v384_v7, %v62_v54  ;;  %v285_v62 = vunpack.c.h.bf16 %v335_v48  ;;  %v308_v63 = vpack.c.bf16 %v131_v59, %v130_v55  ;;  %v64_v0 = vmul.f32 %v281_v56, %v370_v1 }
  0x12   :  { %v86_v2 = vadd.f32 %v384_v7, %v63_v57  ;;  %v65_v3 = vmul.f32 %v284_v58, %v370_v1  ;;  %vm100_vm8 = vcmp.ge.f32.partialorder %v84_v60, 0.0  ;;  %v116_v5 = vmul.f32 0.1, %v84_v60 }
  0x13   :  { %vm101_vm9 = vcmp.ge.f32.partialorder %v85_v61, 0.0  ;;  %v117_v6 = vmul.f32 0.1, %v85_v61  ;;  %339 = vst [vmem:[%s458_s3 + $0x18] sm:$0xff] %v308_v63   ;;  %v87_v8 = vadd.f32 %v384_v7, %v64_v0  ;;  %v66_v10 = vmul.f32 %v285_v62, %v370_v1 }
  0x14   :  { %vm102_vm10 = vcmp.ge.f32.partialorder %v86_v2, 0.0  ;;  %v118_v9 = vmul.f32 0.1, %v86_v2  ;;  %v132_v11 = vsel %vm100_vm8, %v84_v60, %v116_v5  ;;  %v88_v13 = vadd.f32 %v384_v7, %v65_v3 }
  0x15   :  { %v133_v12 = vsel %vm101_vm9, %v85_v61, %v117_v6  ;;  %v288_v14 = vunpack.c.l.bf16 %v336_v4  ;;  %vm103_vm11 = vcmp.ge.f32.partialorder %v87_v8, 0.0  ;;  %v119_v16 = vmul.f32 0.1, %v87_v8 }
  0x16   :  { %v313_v15 = vpack.c.bf16 %v133_v12, %v132_v11  ;;  %v134_v17 = vsel %vm102_vm10, %v86_v2, %v118_v9  ;;  %v89_v18 = vadd.f32 %v384_v7, %v66_v10  ;;  %vm104_vm12 = vcmp.ge.f32.partialorder %v88_v13, 0.0 }
  0x17   :  { %v120_v19 = vmul.f32 0.1, %v88_v13  ;;  %v289_v20 = vunpack.c.h.bf16 %v336_v4  ;;  %v135_v21 = vsel %vm103_vm11, %v87_v8, %v119_v16  ;;  %v67_v22 = vmul.f32 %v288_v14, %v370_v1 }
  0x18   :  { %340 = vst [vmem:[%s458_s3 + $0x20] sm:$0xff] %v313_v15   ;;  %v318_v23 = vpack.c.bf16 %v135_v21, %v134_v17  ;;  %vm105_vm13 = vcmp.ge.f32.partialorder %v89_v18, 0.0  ;;  %v121_v24 = vmul.f32 0.1, %v89_v18 }
  0x19   :  { %v136_v25 = vsel %vm104_vm12, %v88_v13, %v120_v19  ;;  %v68_v26 = vmul.f32 %v289_v20, %v370_v1  ;;  %v90_v27 = vadd.f32 %v384_v7, %v67_v22 }
  0x1a   :  { %341 = vst [vmem:[%s458_s3 + $0x28] sm:$0xff] %v318_v23   ;;  %v137_v28 = vsel %vm105_vm13, %v89_v18, %v121_v24 }
  0x1b   :  { %v323_v29 = vpack.c.bf16 %v137_v28, %v136_v25  ;;  %v91_v30 = vadd.f32 %v384_v7, %v68_v26  ;;  %vm106_vm14 = vcmp.ge.f32.partialorder %v90_v27, 0.0  ;;  %v122_v31 = vmul.f32 0.1, %v90_v27 }
  0x1d   :  { %342 = vst [vmem:[%s458_s3 + $0x30] sm:$0xff] %v323_v29   ;;  %vm107_vm15 = vcmp.ge.f32.partialorder %v91_v30, 0.0  ;;  %v123_v32 = vmul.f32 0.1, %v91_v30  ;;  %v138_v33 = vsel %vm106_vm14, %v90_v27, %v122_v31 }
  0x1f   :  { %v139_v1 = vsel %vm107_vm15, %v91_v30, %v123_v32 }
  0x20   :  { %v328_v34 = vpack.c.bf16 %v139_v1, %v138_v33 }
  0x22   :  { %343 = vst [vmem:[%s458_s3 + $0x38] sm:$0xff] %v328_v34  }

// kernel: basic_block_pallas.6
= control target key start
LH: loop header
LB: loop body
LE: loop exit
PB: predicated region body
PF: predicated region fallthrough
CT: control target
= control target key end

     0   :  { %vm116_vm0 = vcmask 1041408   ;;  %vm91_vm1 = vcmask 293888   ;;  %s615_s1 = inlined_call_operand.vmem [shape: bf16[36,128], index: 1, kind: input, shape index: {}]   ;;  %s616_s0 = inlined_call_operand.vmem [shape: bf16[128,36], index: 0, kind: input, shape index: {}]   ;;  %s617_s2 = inlined_call_operand.vmem [shape: bf16[128,128], index: 2, kind: output, shape index: {0}]   ;;  %s618_s3 = inlined_call_operand.vmem [shape: f32[1,1,128], index: 3, kind: output, shape index: {1}]   ;;  %s619_s4 = inlined_call_operand.vmem [shape: f32[1,1,128], index: 4, kind: output, shape index: {2}]  }
   0x1   :  { %v508_v0 = vld [vmem:[%s615_s1 + $0x10] ss:$0 sps:$4 sm:$0x33]   ;;  %v509_v1 = vld [vmem:[%s615_s1 + $0x8] sm:$0xff]   ;;  %v511_v3 = vld [vmem:[%s616_s0] sm:$0xff]  }
   0x2   :  { %506 = vmatprep.subr.msk.bf16.mxu0 %vm116_vm0, %v508_v0  ;;  %v118_v2 = vsel %vm116_vm0, %v508_v0, 0  ;;  %507 = vmatprep.subr.msk.bf16.mxu1 %vm116_vm0, %v508_v0  ;;  %v510_v4 = vld [vmem:[%s615_s1] sm:$0xff]   ;;  %v512_v6 = vld [vmem:[%s616_s0 + $0x8] sm:$0xff]   ;;  %v513_v8 = vld [vmem:[%s616_s0 + $0x10] sm:$0xff]  }
   0x3   :  { %479 = vmatpush3.bf16.msra.mxu0 %v118_v2  ;;  %503 = vmatpush3.bf16.msra.mxu1 %v118_v2  ;;  %v515_v5 = vld [vmem:[%s616_s0 + $0x20] sm:$0xff]   ;;  %v516_v7 = vld [vmem:[%s616_s0 + $0x28] sm:$0xff]   ;;  %v517_v9 = vld [vmem:[%s616_s0 + $0x30] sm:$0xff]  }
   0x4   :  { %480 = vmatprep.subr.bf16.mxu0 %v509_v1  ;;  %501 = vmatprep.subr.bf16.mxu1 %v509_v1  ;;  %v514_v10 = vld [vmem:[%s616_s0 + $0x18] sm:$0xff]  }
   0x5   :  { %484 = vmatprep.mubr.msk.bf16.mxu0 %vm91_vm1, %v511_v3  ;;  %492 = vmatprep.mubr.msk.bf16.mxu1 %vm91_vm1, %v515_v5  ;;  %v518_v11 = vld [vmem:[%s616_s0 + $0x38] sm:$0xff]  }
   0x7   :  { %481 = vmatpush3.bf16.msra.mxu0 %v509_v1  ;;  %504 = vmatpush3.bf16.msra.mxu1 %v509_v1 }
   0x8   :  { %482 = vmatprep.subr.bf16.mxu0 %v510_v4  ;;  %502 = vmatprep.subr.bf16.mxu1 %v510_v4 }
   0xb   :  { %483 = vmatpush3.bf16.msra.mxu0 %v510_v4  ;;  %505 = vmatpush3.bf16.msra.mxu1 %v510_v4 }
   0xe   :  { %485 = vmatmul.mubr.msk.bf16.vlgmr.msra.gmra.mxu0 %vm91_vm1, %v512_v6  ;;  %493 = vmatmul.mubr.msk.bf16.vlgmr.msra.gmra.mxu1 %vm91_vm1, %v516_v7 }
   0xf   :  { %488 = vmatprep.mubr.msk.bf16.mxu0 %vm91_vm1, %v513_v8  ;;  %496 = vmatprep.mubr.msk.bf16.mxu1 %vm91_vm1, %v517_v9 }
  0x16   :  { %489 = vmatmul.mubr.msk.bf16.gmra.mxu0 %vm91_vm1, %v514_v10  ;;  %497 = vmatmul.mubr.msk.bf16.gmra.mxu1 %vm91_vm1, %v518_v11 }
  0xce   :  { %v486_v12 = vpop.f32.mrf.mxu0  ;;  %v494_v13 = vpop.f32.mrf.mxu1 }
  0xcf   :  { %v321_v29 = vmul.f32 %v486_v12, %v486_v12  ;;  %v329_v63 = vmul.f32 %v494_v13, %v494_v13 }
  0xd0   :  { %v154_v14 = vpop.f32.mrf.mxu0  ;;  %v186_v15 = vpop.f32.mrf.mxu1 }
  0xd1   :  { %v319_v20 = vmul.f32 %v154_v14, %v154_v14  ;;  %v327_v57 = vmul.f32 %v186_v15, %v186_v15 }
  0xd2   :  { %v487_v16 = vpop.f32.mrf.mxu0  ;;  %v495_v17 = vpop.f32.mrf.mxu1 }
  0xd3   :  { %v428_v18 = vpack.c.bf16 %v487_v16, %v486_v12  ;;  %v448_v19 = vpack.c.bf16 %v495_v17, %v494_v13  ;;  %v322_v34 = vmul.f32 %v487_v16, %v487_v16  ;;  %v330_v2 = vmul.f32 %v495_v17, %v495_v17 }
  0xd4   :  { %v157_v21 = vpop.f32.mrf.mxu0  ;;  %v189_v22 = vpop.f32.mrf.mxu1 }
  0xd5   :  { %460 = vst [vmem:[%s617_s2 + $0x8] sm:$0xff] %v428_v18   ;;  %v423_v23 = vpack.c.bf16 %v157_v21, %v154_v14  ;;  %v297_v24 = vadd.f32 %v157_v21, %v154_v14  ;;  %v320_v25 = vmul.f32 %v157_v21, %v157_v21  ;;  %464 = vst [vmem:[%s617_s2 + $0x28] sm:$0xff] %v448_v19  }
  0xd6   :  { %v443_v26 = vpack.c.bf16 %v189_v22, %v186_v15  ;;  %v490_v27 = vpop.f32.mrf.mxu0  ;;  %v498_v28 = vpop.f32.mrf.mxu1  ;;  %v328_v61 = vmul.f32 %v189_v22, %v189_v22 }
  0xd7   :  { %424 = vst [vmem:[%s617_s2] sm:$0xff] %v423_v23   ;;  %v298_v30 = vadd.f32 %v486_v12, %v297_v24  ;;  %v335_v31 = vadd.f32 %v320_v25, %v319_v20  ;;  %v325_v51 = vmul.f32 %v490_v27, %v490_v27  ;;  %v333_v11 = vmul.f32 %v498_v28, %v498_v28 }
  0xd8   :  { %463 = vst [vmem:[%s617_s2 + $0x20] sm:$0xff] %v443_v26   ;;  %v170_v32 = vpop.f32.mrf.mxu0  ;;  %v202_v33 = vpop.f32.mrf.mxu1 }
  0xd9   :  { %v336_v35 = vadd.f32 %v335_v31, %v321_v29  ;;  %v299_v36 = vadd.f32 %v487_v16, %v298_v30  ;;  %v323_v40 = vmul.f32 %v170_v32, %v170_v32  ;;  %v331_v6 = vmul.f32 %v202_v33, %v202_v33 }
  0xda   :  { %v491_v37 = vpop.f32.mrf.mxu0  ;;  %v499_v38 = vpop.f32.mrf.mxu1 }
  0xdb   :  { %v300_v39 = vadd.f32 %v299_v36, %v170_v32  ;;  %v337_v41 = vadd.f32 %v336_v35, %v322_v34  ;;  %v438_v42 = vpack.c.bf16 %v491_v37, %v490_v27  ;;  %v458_v44 = vpack.c.bf16 %v499_v38, %v498_v28 }
  0xdc   :  { %v173_v43 = vpop.f32.mrf.mxu0  ;;  %v205_v45 = vpop.f32.mrf.mxu1  ;;  %v326_v54 = vmul.f32 %v491_v37, %v491_v37  ;;  %v334_v16 = vmul.f32 %v499_v38, %v499_v38 }
  0xdd   :  { %v338_v46 = vadd.f32 %v337_v41, %v323_v40  ;;  %462 = vst [vmem:[%s617_s2 + $0x18] sm:$0xff] %v438_v42   ;;  %v433_v47 = vpack.c.bf16 %v173_v43, %v170_v32  ;;  %v301_v48 = vadd.f32 %v300_v39, %v173_v43  ;;  %v324_v49 = vmul.f32 %v173_v43, %v173_v43 }
  0xde   :  { %466 = vst [vmem:[%s617_s2 + $0x38] sm:$0xff] %v458_v44   ;;  %v453_v50 = vpack.c.bf16 %v205_v45, %v202_v33  ;;  %v332_v10 = vmul.f32 %v205_v45, %v205_v45 }
  0xdf   :  { %461 = vst [vmem:[%s617_s2 + $0x10] sm:$0xff] %v433_v47   ;;  %v302_v52 = vadd.f32 %v490_v27, %v301_v48  ;;  %v339_v53 = vadd.f32 %v338_v46, %v324_v49 }
  0xe0   :  { %465 = vst [vmem:[%s617_s2 + $0x30] sm:$0xff] %v453_v50  }
  0xe1   :  { %v303_v55 = vadd.f32 %v491_v37, %v302_v52  ;;  %v340_v56 = vadd.f32 %v339_v53, %v325_v51 }
  0xe3   :  { %v341_v58 = vadd.f32 %v340_v56, %v326_v54  ;;  %v304_v59 = vadd.f32 %v303_v55, %v186_v15 }
  0xe5   :  { %v305_v60 = vadd.f32 %v304_v59, %v189_v22  ;;  %v342_v62 = vadd.f32 %v341_v58, %v327_v57 }
  0xe7   :  { %v306_v0 = vadd.f32 %v494_v13, %v305_v60  ;;  %v343_v1 = vadd.f32 %v342_v62, %v328_v61 }
  0xe9   :  { %v344_v3 = vadd.f32 %v343_v1, %v329_v63  ;;  %v307_v4 = vadd.f32 %v495_v17, %v306_v0 }
  0xeb   :  { %v308_v5 = vadd.f32 %v307_v4, %v202_v33  ;;  %v345_v7 = vadd.f32 %v344_v3, %v330_v2 }
  0xed   :  { %v346_v8 = vadd.f32 %v345_v7, %v331_v6  ;;  %v309_v9 = vadd.f32 %v308_v5, %v205_v45 }
  0xef   :  { %v310_v12 = vadd.f32 %v498_v28, %v309_v9  ;;  %v347_v14 = vadd.f32 %v346_v8, %v332_v10 }
  0xf1   :  { %v311_v15 = vadd.f32 %v499_v38, %v310_v12  ;;  %v348_v18 = vadd.f32 %v347_v14, %v333_v11 }
  0xf3   :  { %v312_v19 = vrot.slane %v311_v15, 4  ;;  %v349_v20 = vadd.f32 %v348_v18, %v334_v16 }
  0xf5   :  { %v313_v21 = vadd.f32 %v312_v19, %v311_v15  ;;  %v350_v13 = vrot.slane %v349_v20, 4 }
  0xf7   :  { %v314_v22 = vrot.slane %v313_v21, 2  ;;  %v351_v23 = vadd.f32 %v350_v13, %v349_v20 }
  0xf9   :  { %v315_v24 = vadd.f32 %v314_v22, %v313_v21  ;;  %v352_v17 = vrot.slane %v351_v23, 2 }
  0xfb   :  { %v316_v25 = vrot.slane %v315_v24, 1  ;;  %v353_v26 = vadd.f32 %v352_v17, %v351_v23 }
  0xfd   :  { %v317_v27 = vadd.f32 %v316_v25, %v315_v24  ;;  %v354_v29 = vrot.slane %v353_v26, 1 }
  0xff   :  { %318 = vst [vmem:[%s618_s3] sm:$0x1] %v317_v27  ;;  %v355_v28 = vadd.f32 %v354_v29, %v353_v26 }
 0x101   :  { %356 = vst [vmem:[%s619_s4] sm:$0x1] %v355_v28 }

// kernel: basic_block_pallas.8
= control target key start
LH: loop header
LB: loop body
LE: loop exit
PB: predicated region body
PF: predicated region fallthrough
CT: control target
= control target key end

     0   :  { %vm132_vm0 = vcmask 1043456   ;;  %vm107_vm1 = vcmask 588800   ;;  %s651_s1 = inlined_call_operand.vmem [shape: bf16[72,128], index: 1, kind: input, shape index: {}]   ;;  %s652_s0 = inlined_call_operand.vmem [shape: bf16[128,72], index: 0, kind: input, shape index: {}]   ;;  %s653_s2 = inlined_call_operand.vmem [shape: bf16[128,128], index: 2, kind: output, shape index: {0}]   ;;  %s654_s3 = inlined_call_operand.vmem [shape: f32[1,1,128], index: 3, kind: output, shape index: {1}]   ;;  %s655_s4 = inlined_call_operand.vmem [shape: f32[1,1,128], index: 4, kind: output, shape index: {2}]  }
   0x1   :  { %v536_v0 = vld [vmem:[%s651_s1 + $0x20] ss:$0 sps:$4 sm:$0xff]   ;;  %v537_v1 = vld [vmem:[%s651_s1 + $0x18] sm:$0xff]   ;;  %v538_v3 = vld [vmem:[%s651_s1 + $0x10] sm:$0xff]  }
   0x2   :  { %534 = vmatprep.subr.msk.bf16.mxu0 %vm132_vm0, %v536_v0  ;;  %v134_v2 = vsel %vm132_vm0, %v536_v0, 0  ;;  %535 = vmatprep.subr.msk.bf16.mxu1 %vm132_vm0, %v536_v0  ;;  %v541_v4 = vld [vmem:[%s652_s0] sm:$0xff]   ;;  %v539_v5 = vld [vmem:[%s651_s1 + $0x8] sm:$0xff]   ;;  %v543_v10 = vld [vmem:[%s652_s0 + $0x10] sm:$0xff]  }
   0x3   :  { %499 = vmatpush3.bf16.msra.mxu0 %v134_v2  ;;  %529 = vmatpush3.bf16.msra.mxu1 %v134_v2  ;;  %v545_v6 = vld [vmem:[%s652_s0 + $0x20] sm:$0xff]   ;;  %v542_v8 = vld [vmem:[%s652_s0 + $0x8] sm:$0xff]   ;;  %v547_v11 = vld [vmem:[%s652_s0 + $0x30] sm:$0xff]  }
   0x4   :  { %500 = vmatprep.subr.bf16.mxu0 %v537_v1  ;;  %525 = vmatprep.subr.bf16.mxu1 %v537_v1  ;;  %v540_v7 = vld [vmem:[%s651_s1] sm:$0xff]   ;;  %v546_v9 = vld [vmem:[%s652_s0 + $0x28] sm:$0xff]   ;;  %v544_v12 = vld [vmem:[%s652_s0 + $0x18] sm:$0xff]  }
   0x5   :  { %508 = vmatprep.mubr.msk.bf16.mxu0 %vm107_vm1, %v541_v4  ;;  %516 = vmatprep.mubr.msk.bf16.mxu1 %vm107_vm1, %v545_v6  ;;  %v548_v13 = vld [vmem:[%s652_s0 + $0x38] sm:$0xff]  }
   0x7   :  { %501 = vmatpush3.bf16.msra.mxu0 %v537_v1  ;;  %530 = vmatpush3.bf16.msra.mxu1 %v537_v1 }
   0x8   :  { %502 = vmatprep.subr.bf16.mxu0 %v538_v3  ;;  %526 = vmatprep.subr.bf16.mxu1 %v538_v3 }
   0xb   :  { %503 = vmatpush3.bf16.msra.mxu0 %v538_v3  ;;  %531 = vmatpush3.bf16.msra.mxu1 %v538_v3 }
   0xc   :  { %504 = vmatprep.subr.bf16.mxu0 %v539_v5  ;;  %527 = vmatprep.subr.bf16.mxu1 %v539_v5 }
   0xf   :  { %505 = vmatpush3.bf16.msra.mxu0 %v539_v5  ;;  %532 = vmatpush3.bf16.msra.mxu1 %v539_v5 }
  0x10   :  { %506 = vmatprep.subr.bf16.mxu0 %v540_v7  ;;  %528 = vmatprep.subr.bf16.mxu1 %v540_v7 }
  0x13   :  { %507 = vmatpush3.bf16.msra.mxu0 %v540_v7  ;;  %533 = vmatpush3.bf16.msra.mxu1 %v540_v7 }
  0x16   :  { %509 = vmatmul.mubr.msk.bf16.vlgmr.msra.gmra.mxu0 %vm107_vm1, %v542_v8  ;;  %517 = vmatmul.mubr.msk.bf16.vlgmr.msra.gmra.mxu1 %vm107_vm1, %v546_v9 }
  0x17   :  { %512 = vmatprep.mubr.msk.bf16.mxu0 %vm107_vm1, %v543_v10  ;;  %520 = vmatprep.mubr.msk.bf16.mxu1 %vm107_vm1, %v547_v11 }
  0x1e   :  { %513 = vmatmul.mubr.msk.bf16.gmra.mxu0 %vm107_vm1, %v544_v12  ;;  %521 = vmatmul.mubr.msk.bf16.gmra.mxu1 %vm107_vm1, %v548_v13 }
  0xd6   :  { %v510_v14 = vpop.f32.mrf.mxu0  ;;  %v518_v15 = vpop.f32.mrf.mxu1 }
  0xd7   :  { %v337_v31 = vmul.f32 %v510_v14, %v510_v14  ;;  %v345_v1 = vmul.f32 %v518_v15, %v518_v15 }
  0xd8   :  { %v170_v16 = vpop.f32.mrf.mxu0  ;;  %v202_v17 = vpop.f32.mrf.mxu1 }
  0xd9   :  { %v335_v22 = vmul.f32 %v170_v16, %v170_v16  ;;  %v343_v59 = vmul.f32 %v202_v17, %v202_v17 }
  0xda   :  { %v511_v18 = vpop.f32.mrf.mxu0  ;;  %v519_v19 = vpop.f32.mrf.mxu1 }
  0xdb   :  { %v446_v20 = vpack.c.bf16 %v511_v18, %v510_v14  ;;  %v466_v21 = vpack.c.bf16 %v519_v19, %v518_v15  ;;  %v338_v36 = vmul.f32 %v511_v18, %v511_v18  ;;  %v346_v4 = vmul.f32 %v519_v19, %v519_v19 }
  0xdc   :  { %v173_v23 = vpop.f32.mrf.mxu0  ;;  %v205_v24 = vpop.f32.mrf.mxu1 }
  0xdd   :  { %478 = vst [vmem:[%s653_s2 + $0x8] sm:$0xff] %v446_v20   ;;  %v441_v25 = vpack.c.bf16 %v173_v23, %v170_v16  ;;  %v313_v26 = vadd.f32 %v173_v23, %v170_v16  ;;  %v336_v27 = vmul.f32 %v173_v23, %v173_v23  ;;  %482 = vst [vmem:[%s653_s2 + $0x28] sm:$0xff] %v466_v21  }
  0xde   :  { %v461_v28 = vpack.c.bf16 %v205_v24, %v202_v17  ;;  %v514_v29 = vpop.f32.mrf.mxu0  ;;  %v522_v30 = vpop.f32.mrf.mxu1  ;;  %v344_v63 = vmul.f32 %v205_v24, %v205_v24 }
  0xdf   :  { %442 = vst [vmem:[%s653_s2] sm:$0xff] %v441_v25   ;;  %v314_v32 = vadd.f32 %v510_v14, %v313_v26  ;;  %v351_v33 = vadd.f32 %v336_v27, %v335_v22  ;;  %v341_v53 = vmul.f32 %v514_v29, %v514_v29  ;;  %v349_v13 = vmul.f32 %v522_v30, %v522_v30 }
  0xe0   :  { %481 = vst [vmem:[%s653_s2 + $0x20] sm:$0xff] %v461_v28   ;;  %v186_v34 = vpop.f32.mrf.mxu0  ;;  %v218_v35 = vpop.f32.mrf.mxu1 }
  0xe1   :  { %v352_v37 = vadd.f32 %v351_v33, %v337_v31  ;;  %v315_v38 = vadd.f32 %v511_v18, %v314_v32  ;;  %v339_v42 = vmul.f32 %v186_v34, %v186_v34  ;;  %v347_v8 = vmul.f32 %v218_v35, %v218_v35 }
  0xe2   :  { %v515_v39 = vpop.f32.mrf.mxu0  ;;  %v523_v40 = vpop.f32.mrf.mxu1 }
  0xe3   :  { %v316_v41 = vadd.f32 %v315_v38, %v186_v34  ;;  %v353_v43 = vadd.f32 %v352_v37, %v338_v36  ;;  %v456_v44 = vpack.c.bf16 %v515_v39, %v514_v29  ;;  %v476_v46 = vpack.c.bf16 %v523_v40, %v522_v30 }
  0xe4   :  { %v189_v45 = vpop.f32.mrf.mxu0  ;;  %v221_v47 = vpop.f32.mrf.mxu1  ;;  %v342_v56 = vmul.f32 %v515_v39, %v515_v39  ;;  %v350_v18 = vmul.f32 %v523_v40, %v523_v40 }
  0xe5   :  { %v354_v48 = vadd.f32 %v353_v43, %v339_v42  ;;  %480 = vst [vmem:[%s653_s2 + $0x18] sm:$0xff] %v456_v44   ;;  %v451_v49 = vpack.c.bf16 %v189_v45, %v186_v34  ;;  %v317_v50 = vadd.f32 %v316_v41, %v189_v45  ;;  %v340_v51 = vmul.f32 %v189_v45, %v189_v45 }
  0xe6   :  { %484 = vst [vmem:[%s653_s2 + $0x38] sm:$0xff] %v476_v46   ;;  %v471_v52 = vpack.c.bf16 %v221_v47, %v218_v35  ;;  %v348_v12 = vmul.f32 %v221_v47, %v221_v47 }
  0xe7   :  { %479 = vst [vmem:[%s653_s2 + $0x10] sm:$0xff] %v451_v49   ;;  %v318_v54 = vadd.f32 %v514_v29, %v317_v50  ;;  %v355_v55 = vadd.f32 %v354_v48, %v340_v51 }
  0xe8   :  { %483 = vst [vmem:[%s653_s2 + $0x30] sm:$0xff] %v471_v52  }
  0xe9   :  { %v319_v57 = vadd.f32 %v515_v39, %v318_v54  ;;  %v356_v58 = vadd.f32 %v355_v55, %v341_v53 }
  0xeb   :  { %v357_v60 = vadd.f32 %v356_v58, %v342_v56  ;;  %v320_v61 = vadd.f32 %v319_v57, %v202_v17 }
  0xed   :  { %v321_v62 = vadd.f32 %v320_v61, %v205_v24  ;;  %v358_v0 = vadd.f32 %v357_v60, %v343_v59 }
  0xef   :  { %v322_v2 = vadd.f32 %v518_v15, %v321_v62  ;;  %v359_v3 = vadd.f32 %v358_v0, %v344_v63 }
  0xf1   :  { %v360_v5 = vadd.f32 %v359_v3, %v345_v1  ;;  %v323_v6 = vadd.f32 %v519_v19, %v322_v2 }
  0xf3   :  { %v324_v7 = vadd.f32 %v323_v6, %v218_v35  ;;  %v361_v9 = vadd.f32 %v360_v5, %v346_v4 }
  0xf5   :  { %v362_v10 = vadd.f32 %v361_v9, %v347_v8  ;;  %v325_v11 = vadd.f32 %v324_v7, %v221_v47 }
  0xf7   :  { %v326_v14 = vadd.f32 %v522_v30, %v325_v11  ;;  %v363_v16 = vadd.f32 %v362_v10, %v348_v12 }
  0xf9   :  { %v327_v17 = vadd.f32 %v523_v40, %v326_v14  ;;  %v364_v20 = vadd.f32 %v363_v16, %v349_v13 }
  0xfb   :  { %v328_v21 = vrot.slane %v327_v17, 4  ;;  %v365_v22 = vadd.f32 %v364_v20, %v350_v18 }
  0xfd   :  { %v329_v23 = vadd.f32 %v328_v21, %v327_v17  ;;  %v366_v15 = vrot.slane %v365_v22, 4 }
  0xff   :  { %v330_v24 = vrot.slane %v329_v23, 2  ;;  %v367_v25 = vadd.f32 %v366_v15, %v365_v22 }
 0x101   :  { %v331_v26 = vadd.f32 %v330_v24, %v329_v23  ;;  %v368_v19 = vrot.slane %v367_v25, 2 }
 0x103   :  { %v332_v27 = vrot.slane %v331_v26, 1  ;;  %v369_v28 = vadd.f32 %v368_v19, %v367_v25 }
 0x105   :  { %v333_v29 = vadd.f32 %v332_v27, %v331_v26  ;;  %v370_v31 = vrot.slane %v369_v28, 1 }
 0x107   :  { %334 = vst [vmem:[%s654_s3] sm:$0x1] %v333_v29  ;;  %v371_v30 = vadd.f32 %v370_v31, %v369_v28 }
 0x109   :  { %372 = vst [vmem:[%s655_s4] sm:$0x1] %v371_v30 }

// kernel: basic_block_pallas.11
= control target key start
LH: loop header
LB: loop body
LE: loop exit
PB: predicated region body
PF: predicated region fallthrough
CT: control target
= control target key end

     0   :  { %vm184_vm0 = vcmask 1041408   ;;  %vm159_vm1 = vcmask 31744   ;;  %s670_s4 = inlined_call_operand.vmem [shape: bf16[4,128], index: 4, kind: input, shape index: {}]   ;;  %s671_s3 = inlined_call_operand.vmem [shape: bf16[128,4], index: 3, kind: input, shape index: {}]   ;;  %s672_s0 = inlined_call_operand.vmem [shape: bf16[128,128], index: 0, kind: input, shape index: {}]   ;;  %s673_s1 = inlined_call_operand.vmem [shape: f32[1,128], index: 1, kind: input, shape index: {}]   ;;  %s674_s2 = inlined_call_operand.vmem [shape: f32[1,128], index: 2, kind: input, shape index: {}]   ;;  %s675_s5 = inlined_call_operand.vmem [shape: f32[1,128], index: 5, kind: input, shape index: {}]   ;;  %s676_s6 = inlined_call_operand.vmem [shape: f32[128,128], index: 6, kind: output, shape index: {}]  }
   0x1   :  { %v118_v0 = vld [vmem:[%s670_s4] sm:$0x3]  ;;  %v483_v4 = vld [vmem:[%s671_s3 + $0x8] sm:$0xff]   ;;  %v485_v6 = vld [vmem:[%s671_s3 + $0x10] sm:$0xff]  }
   0x2   :  { %479 = vmatprep.subr.msk.bf16.mxu0 %vm184_vm0, %v118_v0  ;;  %480 = vmatprep.subr.msk.bf16.mxu1 %vm184_vm0, %v118_v0  ;;  %v186_v1 = vsel %vm184_vm0, %v118_v0, 0  ;;  %v481_v2 = vld [vmem:[%s671_s3] sm:$0xff]   ;;  %v484_v5 = vld [vmem:[%s671_s3 + $0x28] sm:$0xff]   ;;  %v486_v7 = vld [vmem:[%s671_s3 + $0x30] sm:$0xff]  }
   0x3   :  { %460 = vmatpush3.bf16.msra.mxu0 %v186_v1  ;;  %478 = vmatpush3.bf16.msra.mxu1 %v186_v1  ;;  %v482_v3 = vld [vmem:[%s671_s3 + $0x20] sm:$0xff]   ;;  %v487_v8 = vld [vmem:[%s671_s3 + $0x18] sm:$0xff]   ;;  %v443_v10 = vld [vmem:[%s672_s0 + $0x8] sm:$0xff]  }
   0x4   :  { %461 = vmatprep.mubr.msk.bf16.mxu0 %vm159_vm1, %v481_v2  ;;  %469 = vmatprep.mubr.msk.bf16.mxu1 %vm159_vm1, %v482_v3  ;;  %v488_v9 = vld [vmem:[%s671_s3 + $0x38] sm:$0xff]   ;;  %v447_v11 = vld [vmem:[%s672_s0 + $0x28] sm:$0xff]   ;;  %v412_v12 = vld [vmem:[%s672_s0] sm:$0xff]   ;;  %v417_v14 = vunpack.c.l.bf16 %v443_v10  ;;  %v418_v23 = vunpack.c.h.bf16 %v443_v10 }
   0x5   :  { %v446_v13 = vld [vmem:[%s672_s0 + $0x20] sm:$0xff]   ;;  %v433_v16 = vunpack.c.l.bf16 %v447_v11  ;;  %v445_v17 = vld [vmem:[%s672_s0 + $0x18] sm:$0xff]   ;;  %v413_v18 = vunpack.c.l.bf16 %v412_v12  ;;  %v444_v21 = vld [vmem:[%s672_s0 + $0x10] sm:$0xff]   ;;  %v434_v24 = vunpack.c.h.bf16 %v447_v11  ;;  %v414_v26 = vunpack.c.h.bf16 %v412_v12 }
   0x6   :  { %462 = vmatmul.mubr.msk.bf16.vlgmr.msra.gmra.mxu0 %vm159_vm1, %v483_v4  ;;  %470 = vmatmul.mubr.msk.bf16.vlgmr.msra.gmra.mxu1 %vm159_vm1, %v484_v5  ;;  %v392_v15 = vld [vmem:[%s673_s1] ss:$0 sm:$0xff]  ;;  %v429_v19 = vunpack.c.l.bf16 %v446_v13  ;;  %v449_v20 = vld [vmem:[%s672_s0 + $0x38] sm:$0xff]   ;;  %v448_v22 = vld [vmem:[%s672_s0 + $0x30] sm:$0xff]   ;;  %v430_v27 = vunpack.c.h.bf16 %v446_v13  ;;  %v425_v28 = vunpack.c.l.bf16 %v445_v17  ;;  %v421_v32 = vunpack.c.l.bf16 %v444_v21 }
   0x7   :  { %465 = vmatprep.mubr.msk.bf16.mxu0 %vm159_vm1, %v485_v6  ;;  %473 = vmatprep.mubr.msk.bf16.mxu1 %vm159_vm1, %v486_v7  ;;  %v65_v25 = vmul.f32 %v417_v14, %v392_v15  ;;  %v393_v29 = vld [vmem:[%s674_s2] ss:$0 sm:$0xff]  ;;  %v73_v30 = vmul.f32 %v433_v16, %v392_v15  ;;  %v441_v31 = vunpack.c.l.bf16 %v449_v20  ;;  %v437_v33 = vunpack.c.l.bf16 %v448_v22 }
   0x8   :  { %v63_v34 = vmul.f32 %v413_v18, %v392_v15  ;;  %v71_v35 = vmul.f32 %v429_v19, %v392_v15  ;;  %v426_v36 = vunpack.c.h.bf16 %v445_v17  ;;  %v442_v37 = vunpack.c.h.bf16 %v449_v20  ;;  %v592_v55 = vld [vmem:[%s675_s5] ss:$0 sm:$0xff] }
   0x9   :  { %v66_v38 = vmul.f32 %v418_v23, %v392_v15  ;;  %v74_v39 = vmul.f32 %v434_v24, %v392_v15  ;;  %v422_v40 = vunpack.c.h.bf16 %v444_v21  ;;  %v438_v41 = vunpack.c.h.bf16 %v448_v22 }
   0xa   :  { %v88_v42 = vadd.f32 %v393_v29, %v65_v25  ;;  %v64_v43 = vmul.f32 %v414_v26, %v392_v15  ;;  %v72_v44 = vmul.f32 %v430_v27, %v392_v15  ;;  %v69_v45 = vmul.f32 %v425_v28, %v392_v15 }
   0xb   :  { %v96_v46 = vadd.f32 %v393_v29, %v73_v30  ;;  %v77_v47 = vmul.f32 %v441_v31, %v392_v15  ;;  %v67_v48 = vmul.f32 %v421_v32, %v392_v15  ;;  %v75_v49 = vmul.f32 %v437_v33, %v392_v15 }
   0xc   :  { %v86_v50 = vadd.f32 %v393_v29, %v63_v34  ;;  %v94_v51 = vadd.f32 %v393_v29, %v71_v35  ;;  %v70_v52 = vmul.f32 %v426_v36, %v392_v15  ;;  %v78_v53 = vmul.f32 %v442_v37, %v392_v15 }
   0xd   :  { %v89_v56 = vadd.f32 %v393_v29, %v66_v38  ;;  %v97_v57 = vadd.f32 %v393_v29, %v74_v39  ;;  %v68_v58 = vmul.f32 %v422_v40, %v392_v15  ;;  %v76_v59 = vmul.f32 %v438_v41, %v392_v15 }
   0xe   :  { %466 = vmatmul.mubr.msk.bf16.gmra.mxu0 %vm159_vm1, %v487_v8  ;;  %474 = vmatmul.mubr.msk.bf16.gmra.mxu1 %vm159_vm1, %v488_v9  ;;  %v87_v62 = vadd.f32 %v393_v29, %v64_v43  ;;  %v95_v63 = vadd.f32 %v393_v29, %v72_v44  ;;  %v92_v0 = vadd.f32 %v393_v29, %v69_v45 }
   0xf   :  { %v100_v3 = vadd.f32 %v393_v29, %v77_v47  ;;  %v90_v4 = vadd.f32 %v393_v29, %v67_v48  ;;  %v98_v5 = vadd.f32 %v393_v29, %v75_v49  ;;  %v595_v9 = vadd.f32 %v393_v29, %v70_v52 }
  0x10   :  { %v597_v10 = vadd.f32 %v393_v29, %v78_v53  ;;  %v600_v14 = vadd.f32 %v393_v29, %v68_v58  ;;  %v602_v15 = vadd.f32 %v393_v29, %v76_v59 }
  0xc6   :  { %v463_v54 = vpop.f32.mrf.mxu0  ;;  %v471_v61 = vpop.f32.mrf.mxu1 }
  0xc7   :  { %v287_v60 = vadd.f32 %v463_v54, %v88_v42  ;;  %v295_v1 = vadd.f32 %v471_v61, %v96_v46 }
  0xc8   :  { %v222_v2 = vpop.f32.mrf.mxu0  ;;  %v254_v8 = vpop.f32.mrf.mxu1 }
  0xc9   :  { %v310_v6 = vadd.f32 %v592_v55, %v287_v60  ;;  %v285_v7 = vadd.f32 %v222_v2, %v86_v50  ;;  %v318_v11 = vadd.f32 %v592_v55, %v295_v1  ;;  %v293_v12 = vadd.f32 %v254_v8, %v94_v51 }
  0xca   :  { %v464_v13 = vpop.f32.mrf.mxu0  ;;  %v472_v19 = vpop.f32.mrf.mxu1 }
  0xcb   :  { %vm326_vm2 = vcmp.ge.f32.partialorder %v310_v6, 0.0  ;;  %v342_v16 = vmul.f32 0.1, %v310_v6  ;;  %v308_v17 = vadd.f32 %v592_v55, %v285_v7  ;;  %v288_v18 = vadd.f32 %v464_v13, %v89_v56 }
  0xcc   :  { %vm334_vm3 = vcmp.ge.f32.partialorder %v318_v11, 0.0  ;;  %v350_v20 = vmul.f32 0.1, %v318_v11  ;;  %v316_v21 = vadd.f32 %v592_v55, %v293_v12  ;;  %v296_v22 = vadd.f32 %v472_v19, %v97_v57  ;;  %v225_v23 = vpop.f32.mrf.mxu0  ;;  %v257_v27 = vpop.f32.mrf.mxu1 }
  0xcd   :  { %v358_v24 = vsel %vm326_vm2, %v310_v6, %v342_v16  ;;  %vm324_vm4 = vcmp.ge.f32.partialorder %v308_v17, 0.0  ;;  %v340_v25 = vmul.f32 0.1, %v308_v17  ;;  %v311_v26 = vadd.f32 %v592_v55, %v288_v18 }
  0xce   :  { %374 = vst [vmem:[%s676_s6 + $0x10] sm:$0xff] %v358_v24  ;;  %v366_v28 = vsel %vm334_vm3, %v318_v11, %v350_v20  ;;  %vm332_vm5 = vcmp.ge.f32.partialorder %v316_v21, 0.0  ;;  %v348_v29 = vmul.f32 0.1, %v316_v21  ;;  %v319_v30 = vadd.f32 %v592_v55, %v296_v22  ;;  %v467_v31 = vpop.f32.mrf.mxu0  ;;  %v475_v35 = vpop.f32.mrf.mxu1 }
  0xcf   :  { %382 = vst [vmem:[%s676_s6 + $0x50] sm:$0xff] %v366_v28  ;;  %v356_v32 = vsel %vm324_vm4, %v308_v17, %v340_v25  ;;  %vm327_vm6 = vcmp.ge.f32.partialorder %v311_v26, 0.0  ;;  %v343_v33 = vmul.f32 0.1, %v311_v26  ;;  %v286_v34 = vadd.f32 %v225_v23, %v87_v62 }
  0xd0   :  { %372 = vst [vmem:[%s676_s6] sm:$0xff] %v356_v32  ;;  %v364_v36 = vsel %vm332_vm5, %v316_v21, %v348_v29  ;;  %vm335_vm7 = vcmp.ge.f32.partialorder %v319_v30, 0.0  ;;  %v351_v37 = vmul.f32 0.1, %v319_v30  ;;  %v294_v38 = vadd.f32 %v257_v27, %v95_v63  ;;  %v238_v39 = vpop.f32.mrf.mxu0  ;;  %v270_v44 = vpop.f32.mrf.mxu1 }
  0xd1   :  { %380 = vst [vmem:[%s676_s6 + $0x40] sm:$0xff] %v364_v36  ;;  %v359_v40 = vsel %vm327_vm6, %v311_v26, %v343_v33  ;;  %v309_v41 = vadd.f32 %v592_v55, %v286_v34  ;;  %v291_v42 = vadd.f32 %v467_v31, %v92_v0  ;;  %v299_v43 = vadd.f32 %v475_v35, %v100_v3 }
  0xd2   :  { %375 = vst [vmem:[%s676_s6 + $0x18] sm:$0xff] %v359_v40  ;;  %v367_v45 = vsel %vm335_vm7, %v319_v30, %v351_v37  ;;  %v317_v46 = vadd.f32 %v592_v55, %v294_v38  ;;  %v289_v47 = vadd.f32 %v238_v39, %v90_v4  ;;  %v297_v48 = vadd.f32 %v270_v44, %v98_v5  ;;  %v468_v49 = vpop.f32.mrf.mxu0  ;;  %v476_v53 = vpop.f32.mrf.mxu1 }
  0xd3   :  { %383 = vst [vmem:[%s676_s6 + $0x58] sm:$0xff] %v367_v45  ;;  %vm325_vm8 = vcmp.ge.f32.partialorder %v309_v41, 0.0  ;;  %v341_v50 = vmul.f32 0.1, %v309_v41  ;;  %v314_v51 = vadd.f32 %v592_v55, %v291_v42  ;;  %v322_v52 = vadd.f32 %v592_v55, %v299_v43 }
  0xd4   :  { %vm333_vm9 = vcmp.ge.f32.partialorder %v317_v46, 0.0  ;;  %v349_v54 = vmul.f32 0.1, %v317_v46  ;;  %v312_v56 = vadd.f32 %v592_v55, %v289_v47  ;;  %v320_v57 = vadd.f32 %v592_v55, %v297_v48  ;;  %v241_v60 = vpop.f32.mrf.mxu0  ;;  %v273_v0 = vpop.f32.mrf.mxu1 }
  0xd5   :  { %v357_v58 = vsel %vm325_vm8, %v309_v41, %v341_v50  ;;  %vm330_vm10 = vcmp.ge.f32.partialorder %v314_v51, 0.0  ;;  %v346_v59 = vmul.f32 0.1, %v314_v51  ;;  %vm338_vm11 = vcmp.ge.f32.partialorder %v322_v52, 0.0 }
  0xd6   :  { %373 = vst [vmem:[%s676_s6 + $0x8] sm:$0xff] %v357_v58  ;;  %v365_v61 = vsel %vm333_vm9, %v317_v46, %v349_v54  ;;  %v354_v62 = vmul.f32 0.1, %v322_v52  ;;  %vm328_vm12 = vcmp.ge.f32.partialorder %v312_v56, 0.0  ;;  %v344_v63 = vmul.f32 0.1, %v312_v56 }
  0xd7   :  { %381 = vst [vmem:[%s676_s6 + $0x48] sm:$0xff] %v365_v61  ;;  %v362_v1 = vsel %vm330_vm10, %v314_v51, %v346_v59  ;;  %vm336_vm13 = vcmp.ge.f32.partialorder %v320_v57, 0.0  ;;  %v352_v2 = vmul.f32 0.1, %v320_v57  ;;  %v292_v3 = vadd.f32 %v468_v49, %v595_v9 }
  0xd8   :  { %378 = vst [vmem:[%s676_s6 + $0x30] sm:$0xff] %v362_v1  ;;  %v370_v4 = vsel %vm338_vm11, %v322_v52, %v354_v62  ;;  %v360_v5 = vsel %vm328_vm12, %v312_v56, %v344_v63  ;;  %v300_v6 = vadd.f32 %v476_v53, %v597_v10  ;;  %v290_v7 = vadd.f32 %v241_v60, %v600_v14 }
  0xd9   :  { %386 = vst [vmem:[%s676_s6 + $0x70] sm:$0xff] %v370_v4  ;;  %376 = vst [vmem:[%s676_s6 + $0x20] sm:$0xff] %v360_v5  ;;  %v368_v8 = vsel %vm336_vm13, %v320_v57, %v352_v2  ;;  %v315_v9 = vadd.f32 %v592_v55, %v292_v3  ;;  %v298_v11 = vadd.f32 %v273_v0, %v602_v15 }
  0xda   :  { %384 = vst [vmem:[%s676_s6 + $0x60] sm:$0xff] %v368_v8  ;;  %v323_v10 = vadd.f32 %v592_v55, %v300_v6  ;;  %v313_v12 = vadd.f32 %v592_v55, %v290_v7 }
  0xdb   :  { %vm331_vm14 = vcmp.ge.f32.partialorder %v315_v9, 0.0  ;;  %v347_v13 = vmul.f32 0.1, %v315_v9  ;;  %v321_v14 = vadd.f32 %v592_v55, %v298_v11 }
  0xdc   :  { %vm339_vm15 = vcmp.ge.f32.partialorder %v323_v10, 0.0  ;;  %v355_v16 = vmul.f32 0.1, %v323_v10  ;;  %vm329_vm0 = vcmp.ge.f32.partialorder %v313_v12, 0.0  ;;  %v345_v17 = vmul.f32 0.1, %v313_v12 }
  0xdd   :  { %v363_v18 = vsel %vm331_vm14, %v315_v9, %v347_v13  ;;  %vm337_vm1 = vcmp.ge.f32.partialorder %v321_v14, 0.0  ;;  %v353_v19 = vmul.f32 0.1, %v321_v14 }
  0xde   :  { %379 = vst [vmem:[%s676_s6 + $0x38] sm:$0xff] %v363_v18  ;;  %v371_v15 = vsel %vm339_vm15, %v323_v10, %v355_v16  ;;  %v361_v20 = vsel %vm329_vm0, %v313_v12, %v345_v17 }
  0xdf   :  { %387 = vst [vmem:[%s676_s6 + $0x78] sm:$0xff] %v371_v15  ;;  %377 = vst [vmem:[%s676_s6 + $0x28] sm:$0xff] %v361_v20  ;;  %v369_v55 = vsel %vm337_vm1, %v321_v14, %v353_v19 }
  0xe0   :  { %385 = vst [vmem:[%s676_s6 + $0x68] sm:$0xff] %v369_v55 }

</bundles_post_ra>
